<compile_context>
chip_gen: v7x
topology: tpu7x:2x2x1
jax: 0.10.0
libtpu: 0.0.40
codegen_flags: <defaults>
</compile_context>

<pallas_src>
import functools

import jax
import jax.numpy as jnp
from jax import lax
from jax.experimental import pallas as pl
from jax.experimental.pallas import tpu as pltpu

LANE = 128


def _round_up(x, m):
    return ((x + m - 1) // m) * m


def _sq_diff_sum_kernel(img_ref, rec_ref, out_ref, acc_ref, *,
                        tile_rows, rows, steps_per_slice, needs_guard):
    """Accumulates sum((rec - img)^2) over this slice's row range.

    All pl.program_id / pl.num_programs reads happen at the top level of the
    kernel body and are closed over by the pl.when bodies below.
    """
    sl = pl.program_id(0)               # slice index (leading "parallel" axis)
    step = pl.program_id(1)             # reduction step within the slice
    last_step = pl.num_programs(1) - 1

    is_first = step == 0
    is_last = step == last_step
    blk = sl * steps_per_slice + step               # logical (unclamped) tile id
    row0 = blk * tile_rows                          # first logical row of this tile

    @pl.when(is_first)
    def _init():
        acc_ref[...] = jnp.zeros_like(acc_ref)

    # Hot loop: pure VPU.  Stream both tiles, upcast, square the difference.
    d = rec_ref[...].astype(jnp.float32) - img_ref[...].astype(jnp.float32)
    d2 = d * d
    lane = d2.shape[-1]
    groups = tile_rows // 8

    def tile_partial(x):
        # (tile_rows, lane) -> (8, lane) partial with elementwise VALU adds only
        # (the reshape splits the sublane dim in groups of 8; no cross-lane work).
        return jnp.sum(x.reshape(groups, 8, lane), axis=0)

    if needs_guard:
        # Only the last logical tile (and any fully out-of-range tile when the
        # slices over-cover the grid) takes the masked path.
        full_block = (row0 + tile_rows) <= rows

        @pl.when(full_block)
        def _acc_full():
            acc_ref[...] += tile_partial(d2)

        @pl.when(jnp.logical_not(full_block))
        def _acc_masked():
            r = lax.broadcasted_iota(jnp.int32, (tile_rows, lane), 0)
            valid = (row0 + r) < rows
            acc_ref[...] += tile_partial(jnp.where(valid, d2, 0.0))
    else:
        acc_ref[...] += tile_partial(d2)

    @pl.when(is_last)
    def _finalize():
        # Single cheap cross-lane collapse of the (8, lane) accumulator, written
        # once per slice as a lane-dense (1, 1, 128) block.
        total = jnp.sum(acc_ref[...])
        out_ref[...] = jnp.full(out_ref.shape, total, dtype=jnp.float32)


def total_loss(input_images, target, reconstructions, digit_probs,
               m_pos=0.9, m_neg=0.1, lambda_=0.5, recon_factor=0.0005,
               *, tile_rows=4096, num_slices=1):
    """input_images/reconstructions: any shape (e.g. [B,C,H,W]); target/digit_probs: [B,K]."""
    assert input_images.shape == reconstructions.shape
    B = target.shape[0]
    n = int(input_images.size)

    # ---- Margin loss: tiny [B, K] work, computed with plain jnp in the wrapper. ----
    probs = digit_probs.astype(jnp.float32)
    tgt = target.astype(jnp.float32)
    present = tgt * jnp.square(jnp.maximum(m_pos - probs, 0.0))
    absent = (1.0 - tgt) * jnp.square(jnp.maximum(probs - m_neg, 0.0))
    margin = jnp.sum(present + lambda_ * absent) / float(B)

    # ---- Reconstruction: sum of squared differences via the Pallas kernel. ----
    img_flat = input_images.reshape(-1)
    rec_flat = reconstructions.reshape(-1)

    rows = n // LANE                      # full lane-rows streamed by the kernel
    rem = n - rows * LANE                 # < 128 trailing elements (usually 0)
    sq_sum = jnp.float32(0.0)

    if rem:  # tiny ragged tail (< 128 elems): plain jnp, negligible.
        ti = img_flat[rows * LANE:].astype(jnp.float32)
        tr = rec_flat[rows * LANE:].astype(jnp.float32)
        sq_sum = sq_sum + jnp.sum(jnp.square(tr - ti))

    if rows > 0:
        if rem:
            img_main = img_flat[: rows * LANE]
            rec_main = rec_flat[: rows * LANE]
        else:
            img_main = img_flat          # no slice at all -> reshape is free
            rec_main = rec_flat
        img2d = img_main.reshape(rows, LANE)
        rec2d = rec_main.reshape(rows, LANE)

        t_rows = max(8, min(int(tile_rows), _round_up(rows, 8)))
        t_rows = _round_up(t_rows, 8)
        total_blocks = pl.cdiv(rows, t_rows)
        n_slices = max(1, min(int(num_slices), total_blocks))
        steps = pl.cdiv(total_blocks, n_slices)
        needs_guard = (n_slices * steps * t_rows) != rows
        last_block = total_blocks - 1

        def in_index(sl, st):
            b = sl * steps + st
            # Clamp so over-covering slices never issue an out-of-range DMA; the
            # in-kernel row mask zeroes any such duplicate tile's contribution.
            return (jnp.minimum(b, last_block), 0)

        kernel = functools.partial(
            _sq_diff_sum_kernel,
            tile_rows=t_rows, rows=rows,
            steps_per_slice=steps, needs_guard=needs_guard)

        stream_spec = pl.BlockSpec((t_rows, LANE), in_index)
        grid_spec = pltpu.PrefetchScalarGridSpec(
            num_scalar_prefetch=0,
            grid=(n_slices, steps),
            in_specs=[stream_spec, stream_spec],
            out_specs=pl.BlockSpec((1, 1, LANE), lambda sl, st: (sl, 0, 0)),
            scratch_shapes=[pltpu.VMEM((8, LANE), jnp.float32)],
        )

        partials = pl.pallas_call(
            kernel,
            out_shape=jax.ShapeDtypeStruct((n_slices, 1, LANE), jnp.float32),
            grid_spec=grid_spec,
            compiler_params=pltpu.CompilerParams(
                dimension_semantics=("parallel", "arbitrary")),
        )(img2d, rec2d)

        sq_sum = sq_sum + jnp.sum(partials[:, 0, 0])

    recon = sq_sum / float(n)
    return margin + recon_factor * recon


def _reference(input_images, target, reconstructions, digit_probs,
               m_pos=0.9, m_neg=0.1, lambda_=0.5, recon_factor=0.0005):
    present = target * jnp.maximum(m_pos - digit_probs, 0.0) ** 2
    absent = (1.0 - target) * jnp.maximum(digit_probs - m_neg, 0.0) ** 2
    margin = jnp.mean(jnp.sum(present + lambda_ * absent, axis=1))
    diff = reconstructions.astype(jnp.float32) - input_images.astype(jnp.float32)
    recon = jnp.mean(diff * diff)
    return margin + recon_factor * recon


if __name__ == "__main__":
    key = jax.random.PRNGKey(0)
    k1, k2, k3, k4 = jax.random.split(key, 4)

    # --- Test 1: small shapes, default tiling (single step, no masking). ---
    B, C, H, W, K = 2, 4, 16, 16, 10
    img = jax.random.uniform(k1, (B, C, H, W), dtype=jnp.float32)
    rec = jax.random.uniform(k2, (B, C, H, W), dtype=jnp.float32)
    labels = jax.random.randint(k3, (B,), 0, K)
    tgt = jax.nn.one_hot(labels, K, dtype=jnp.float32)
    probs = jax.random.uniform(k4, (B, K), dtype=jnp.float32)

    out = jax.block_until_ready(total_loss(img, tgt, rec, probs))
    ref = _reference(img, tgt, rec, probs)
    assert jnp.allclose(out, ref, rtol=1e-5, atol=1e-6), (out, ref)

    # --- Test 2: ragged row count + tiny tiles -> multi-step accumulation and
    #     in-kernel masking of the partial last tile. ---
    k5, k6, k7, k8 = jax.random.split(jax.random.PRNGKey(1), 4)
    B2, C2, H2, W2 = 4, 3, 31, 32
    img2 = jax.random.uniform(k5, (B2, C2, H2, W2), dtype=jnp.float32)
    rec2 = jax.random.uniform(k6, (B2, C2, H2, W2), dtype=jnp.float32)
    labels2 = jax.random.randint(k7, (B2,), 0, K)
    tgt2 = jax.nn.one_hot(labels2, K, dtype=jnp.float32)
    probs2 = jax.random.uniform(k8, (B2, K), dtype=jnp.float32)

    out2 = jax.block_until_ready(total_loss(img2, tgt2, rec2, probs2, tile_rows=8))
    ref2 = _reference(img2, tgt2, rec2, probs2)
    assert jnp.allclose(out2, ref2, rtol=1e-5, atol=1e-6), (out2, ref2)

    # --- Test 3: bf16 images stay bf16 in HBM; upcast happens inside the kernel. ---
    out3 = jax.block_until_ready(
        total_loss(img.astype(jnp.bfloat16), tgt, rec.astype(jnp.bfloat16), probs))
    ref3 = _reference(img.astype(jnp.bfloat16), tgt, rec.astype(jnp.bfloat16), probs)
    assert jnp.allclose(out3, ref3, rtol=1e-5, atol=1e-6), (out3, ref3)

    # --- Test 4: multi-slice grid (opt-in path for v7x), including slices that
    #     over-cover the tile grid (clamped index_map + zero mask). ---
    out4 = jax.block_until_ready(
        total_loss(img2, tgt2, rec2, probs2, tile_rows=8, num_slices=5))
    assert jnp.allclose(out4, ref2, rtol=1e-5, atol=1e-6), (out4, ref2)

    print("KERNEL_OK")
</pallas_src>

<mosaic_0001>
module attributes {stable_mosaic.version = 11 : i64} {
  func.func @_sq_diff_sum_kernel(%arg0: i32, %arg1: i32, %arg2: memref<16x128xf32, #tpu.memory_space<vmem>>, %arg3: memref<16x128xf32, #tpu.memory_space<vmem>>, %arg4: memref<1x1x128xf32, #tpu.memory_space<vmem>>, %arg5: memref<8x128xf32, #tpu.memory_space<vmem>>) attributes {dimension_semantics = [#tpu.dimension_semantics<parallel>, #tpu.dimension_semantics<arbitrary>], iteration_bounds = array<i64: 1, 1>, scalar_prefetch = 0 : i64, scratch_operands = 1 : i64, tpu.core_type = #tpu.core_type<tc>, window_params = [{transform_indices = @transform_0, window_bounds = array<i64: 16, 128>}, {transform_indices = @transform_1, window_bounds = array<i64: 16, 128>}, {transform_indices = @transform_2, window_bounds = array<i64: 1, 1, 128>}]} {
    %c0_i32 = arith.constant 0 : i32
    %0 = arith.cmpi eq, %arg1, %c0_i32 : i32
    %c0_i32_0 = arith.constant 0 : i32
    %1 = arith.cmpi eq, %arg1, %c0_i32_0 : i32
    %2 = arith.extui %0 : i1 to i32
    %c0_i32_1 = arith.constant 0 : i32
    %3 = arith.cmpi ne, %2, %c0_i32_1 : i32
    scf.if %3 {
      %cst_10 = arith.constant 0.000000e+00 : f32
      %15 = vector.broadcast %cst_10 : f32 to vector<8x128xf32>
      %c0_11 = arith.constant 0 : index
      %c0_12 = arith.constant 0 : index
      %16 = vector.load %arg5[%c0_11, %c0_12] : memref<8x128xf32, #tpu.memory_space<vmem>>, vector<8x128xf32>
      tpu.vector_store %arg5[%c0_11, %c0_12], %15 {strides = array<i32>} : memref<8x128xf32, #tpu.memory_space<vmem>>, vector<8x128xf32>,
    } else {
    }
    %c0 = arith.constant 0 : index
    %c0_2 = arith.constant 0 : index
    %4 = vector.load %arg3[%c0, %c0_2] : memref<16x128xf32, #tpu.memory_space<vmem>>, vector<16x128xf32>
    %c0_3 = arith.constant 0 : index
    %c0_4 = arith.constant 0 : index
    %5 = vector.load %arg2[%c0_3, %c0_4] : memref<16x128xf32, #tpu.memory_space<vmem>>, vector<16x128xf32>
    %6 = arith.subf %4, %5 : vector<16x128xf32>
    %7 = arith.mulf %6, %6 : vector<16x128xf32>
    %c0_5 = arith.constant 0 : index
    %c0_6 = arith.constant 0 : index
    %8 = vector.load %arg5[%c0_5, %c0_6] : memref<8x128xf32, #tpu.memory_space<vmem>>, vector<8x128xf32>
    %9 = vector.shape_cast %7 : vector<16x128xf32> to vector<2x8x128xf32>
    %cst = arith.constant dense<0.000000e+00> : vector<8x128xf32>
    %10 = vector.multi_reduction <add>, %9, %cst [0] : vector<2x8x128xf32> to vector<8x128xf32>
    %11 = arith.addf %8, %10 : vector<8x128xf32>
    %c0_7 = arith.constant 0 : index
    %c0_8 = arith.constant 0 : index
    %12 = vector.load %arg5[%c0_7, %c0_8] : memref<8x128xf32, #tpu.memory_space<vmem>>, vector<8x128xf32>
    tpu.vector_store %arg5[%c0_7, %c0_8], %11 {strides = array<i32>} : memref<8x128xf32, #tpu.memory_space<vmem>>, vector<8x128xf32>,
    %13 = arith.extui %1 : i1 to i32
    %c0_i32_9 = arith.constant 0 : i32
    %14 = arith.cmpi ne, %13, %c0_i32_9 : i32
    scf.if %14 {
      %c0_10 = arith.constant 0 : index
      %c0_11 = arith.constant 0 : index
      %15 = vector.load %arg5[%c0_10, %c0_11] : memref<8x128xf32, #tpu.memory_space<vmem>>, vector<8x128xf32>
      %16 = vector.shape_cast %15 : vector<8x128xf32> to vector<1x8x128xf32>
      %cst_12 = arith.constant dense<0.000000e+00> : vector<1xf32>
      %17 = vector.multi_reduction <add>, %16, %cst_12 [1, 2] : vector<1x8x128xf32> to vector<1xf32>
      %18 = vector.shape_cast %17 : vector<1xf32> to vector<1x1x1xf32>
      %19 = vector.extract %18[0, 0, 0] : f32 from vector<1x1x1xf32>
      %20 = vector.broadcast %19 : f32 to vector<1x1x128xf32>
      %c0_13 = arith.constant 0 : index
      %c0_14 = arith.constant 0 : index
      %c0_15 = arith.constant 0 : index
      %21 = vector.load %arg4[%c0_13, %c0_14, %c0_15] : memref<1x1x128xf32, #tpu.memory_space<vmem>>, vector<1x1x128xf32>
      tpu.vector_store %arg4[%c0_13, %c0_14, %c0_15], %20 {strides = array<i32>} : memref<1x1x128xf32, #tpu.memory_space<vmem>>, vector<1x1x128xf32>,
    } else {
    }
    return
  }
  func.func @transform_0(%arg0: i32, %arg1: i32) -> (i32, i32) {
    %c1_i32 = arith.constant 1 : i32
    %0 = arith.muli %arg0, %c1_i32 : i32
    %1 = arith.addi %0, %arg1 : i32
    %c0_i32 = arith.constant 0 : i32
    %2 = arith.minsi %1, %c0_i32 : i32
    %c0_i32_0 = arith.constant 0 : i32
    %c0_i32_1 = arith.constant 0 : i32
    return %2, %c0_i32_0 : i32, i32
  }
  func.func @transform_1(%arg0: i32, %arg1: i32) -> (i32, i32) {
    %c1_i32 = arith.constant 1 : i32
    %0 = arith.muli %arg0, %c1_i32 : i32
    %1 = arith.addi %0, %arg1 : i32
    %c0_i32 = arith.constant 0 : i32
    %2 = arith.minsi %1, %c0_i32 : i32
    %c0_i32_0 = arith.constant 0 : i32
    %c0_i32_1 = arith.constant 0 : i32
    return %2, %c0_i32_0 : i32, i32
  }
  func.func @transform_2(%arg0: i32, %arg1: i32) -> (i32, i32, i32) {
    %c0_i32 = arith.constant 0 : i32
    %c0_i32_0 = arith.constant 0 : i32
    %c0_i32_1 = arith.constant 0 : i32
    return %arg0, %c0_i32, %c0_i32_0 : i32, i32, i32
  }
}

</mosaic_0001>

<bundles_post_ra>
// kernel: tpu_custom_call.1
= control target key start
LH: loop header
LB: loop body
LE: loop exit
PB: predicated region body
PF: predicated region fallthrough
CT: control target
= control target key end

     0   :  { %7 = vsyncpa [#allocation4], 0  ;;  %s247_s0 = inlined_call_operand.hbm [shape: f32[16,128], index: 0, kind: input, shape index: {}]   ;;  %s248_s1 = inlined_call_operand.hbm [shape: f32[16,128], index: 1, kind: input, shape index: {}]   ;;  %s249_s2 = inlined_call_operand.hbm [shape: f32[1,1,128], index: 2, kind: output, shape index: {}]  }
   0x1   :  { %8 = vsyncpa [#allocation7], 0 }
   0x2   :  { %9 = vsyncpa [#allocation5], 0  ;;  %s191_s9 = smov [#allocation3]   ;;  %s119_s13 = scalar_lea.hbm %s247_s0, 256 }
   0x3   :  { %s21_s10 = sshll.u32 %s191_s9, 4  ;;  %p120_p0 = scmp.ne.s32.totalorder %s247_s0, %s119_s13  ;;  %s22_s10 = int_to_ptr.vmem [resolvable:$true] %s21_s10 }
   0x4   :  { %p123_p1 = scmp.lt.u32.totalorder %s119_s13, %s247_s0 }
   0x6   :  { %p125_p2 = pnand %p123_p1, %p120_p0 }
   0x8   :  { %128 = shalt.err (!%p125_p2)
}
   0x9   :  { %s129_s18 = scalar_lea.vmem %s22_s10, 256  ;;  %p134_p4 = scmp.lt.s32.totalorder %s22_s10, %s22_s10 }
   0xa   :  { %p130_p3 = scmp.ne.s32.totalorder %s22_s10, %s129_s18  ;;  %p135_p5 = scmp.lt.s32.totalorder %s129_s18, %s129_s18 }
   0xc   :  { %p136_p6 = por %p135_p5, %p134_p4 }
   0xe   :  { %p137_p7 = pnand %p136_p6, %p130_p3 }
  0x10   :  { %140 = shalt.err (!%p137_p7)
}
  0x11   :  { %s192_s19 = smov 128   ;;  %s193_s20 = smov 8  }
  0x12   :  { %27 = dma.hbm_to_vmem [thread:$0]  %s247_s0, 256, %s22_s10, [#allocation4], %s192_s19, %s192_s19, %s193_s20  }
  0x13   :  { %s194_s23 = smov [#allocation6]   ;;  %s141_s27 = scalar_lea.hbm %s248_s1, 256 }
  0x14   :  { %s39_s24 = sshll.u32 %s194_s23, 4  ;;  %p142_p8 = scmp.ne.s32.totalorder %s248_s1, %s141_s27  ;;  %s40_s24 = int_to_ptr.vmem [resolvable:$true] %s39_s24 }
  0x15   :  { %p145_p9 = scmp.lt.u32.totalorder %s141_s27, %s248_s1 }
  0x17   :  { %p147_p10 = pnand %p145_p9, %p142_p8 }
  0x19   :  { %150 = shalt.err (!%p147_p10)
}
  0x1a   :  { %s151_s4 = scalar_lea.vmem %s40_s24, 256  ;;  %p156_p12 = scmp.lt.s32.totalorder %s40_s24, %s40_s24 }
  0x1b   :  { %p152_p11 = scmp.ne.s32.totalorder %s40_s24, %s151_s4  ;;  %p157_p13 = scmp.lt.s32.totalorder %s151_s4, %s151_s4 }
  0x1d   :  { %p158_p0 = por %p157_p13, %p156_p12 }
  0x1f   :  { %p159_p1 = pnand %p158_p0, %p152_p11 }
  0x21   :  { %162 = shalt.err (!%p159_p1)
}
  0x22   :  { %45 = dma.hbm_to_vmem [thread:$0]  %s248_s1, 256, %s40_s24, [#allocation7], %s192_s19, %s192_s19, %s193_s20  }
  0x23   :  { %185 = dma.done.wait [#allocation4], 256  }
  0x24   :  { %186 = vsyncadd [#allocation4], 4294967040 }
  0x25   :  { %187 = dma.done.wait [#allocation7], 256  }
  0x26   :  { %188 = vsyncadd [#allocation7], 4294967040  ;;  %v65_v0 = vld [vmem:[#allocation6] sm:$0xff]  ;;  %v66_v1 = vld [vmem:[#allocation6 + $0x8] sm:$0xff]  ;;  %s195_s1 = smov [#allocation8]  }
  0x27   :  { %v67_v2 = vld [vmem:[#allocation3] sm:$0xff]  ;;  %v68_v3 = vld [vmem:[#allocation3 + $0x8] sm:$0xff]  ;;  %s98_s6 = sshll.u32 %s195_s1, 4  ;;  %s99_s6 = int_to_ptr.vmem [resolvable:$true] %s98_s6 }
  0x28   :  { %v69_v4 = vsub.f32 %v65_v0, %v67_v2  ;;  %v70_v5 = vsub.f32 %v66_v1, %v68_v3  ;;  %s163_s8 = scalar_lea.vmem %s99_s6, 16  ;;  %s167_s9 = scalar_lea.vmem %s99_s6, 32 }
  0x29   :  { %p164_p2 = scmp.ne.s32.totalorder %s99_s6, %s163_s8  ;;  %p168_p3 = scmp.lt.s32.totalorder %s99_s6, %s99_s6 }
  0x2a   :  { %v71_v6 = vmul.f32 %v69_v4, %v69_v4  ;;  %v72_v7 = vmul.f32 %v70_v5, %v70_v5  ;;  %p169_p4 = scmp.lt.s32.totalorder %s167_s9, %s163_s8 }
  0x2c   :  { %v74_v8 = vadd.f32 %v72_v7, %v71_v6  ;;  %p170_p5 = por %p169_p4, %p168_p3 }
  0x2e   :  { %81 = vadd.xlane.f32.xlu0 %v74_v8  ;;  %p171_p6 = pnand %p170_p5, %p164_p2 }
  0xbb   :  { %v82_v9 = vpop.xlane.xlu0 %81 }
  0xbc   :  { %v83_v10 = vrot.slane %v82_v9, 4 }
  0xbe   :  { %v84_v11 = vadd.f32 %v83_v10, %v82_v9 }
  0xc0   :  { %v85_v12 = vrot.slane %v84_v11, 2 }
  0xc2   :  { %v86_v13 = vadd.f32 %v85_v12, %v84_v11 }
  0xc4   :  { %v87_v14 = vrot.slane %v86_v13, 1 }
  0xc6   :  { %v88_v15 = vadd.f32 %v87_v14, %v86_v13 }
  0xc8   :  { %112 = vpush %v88_v15 }
  0xf9   :  { %s113_s7 = spop %112 }
  0xfa   :  { %v90_v16 = vstv %s113_s7 }
  0xfb   :  { %91 = vst [vmem:[#allocation8] sm:$0x1] %v90_v16 }
  0xfc   :  { %174 = shalt.err (!%p171_p6)
}
  0xfd   :  { %s175_s12 = scalar_lea.hbm %s249_s2, 16 }
  0xfe   :  { %p176_p7 = scmp.ne.s32.totalorder %s249_s2, %s175_s12  ;;  %p179_p8 = scmp.lt.u32.totalorder %s175_s12, %s249_s2 }
 0x100   :  { %p181_p9 = pnand %p179_p8, %p176_p7 }
 0x102   :  { %184 = shalt.err (!%p181_p9)
}
 0x103   :  { %101 = dma.vmem_to_hbm [thread:$0]  %s99_s6, 16, %s249_s2, [#allocation5]  }
 0x104   :  { %189 = dma.done.wait [#allocation5], 16  }
 0x105   :  { %190 = vsyncadd [#allocation5], 4294967280 }
 0x106   :  { %105 = vsyncpa [#allocation4], 1 }
 0x107   :  { %106 = vsyncpa [#allocation7], 1 }
 0x108   :  { %107 = vsyncpa [#allocation5], 1 }

</bundles_post_ra>
